<compile_context>
chip_gen: v7x
topology: tpu7x:2x2x1
jax: 0.10.0
libtpu: 0.0.40
codegen_flags: <defaults>
</compile_context>

<pallas_src>
import functools

import jax
import jax.numpy as jnp
from jax.experimental import pallas as pl
from jax.experimental.pallas import tpu as pltpu

NEG_SLOPE = 0.01  # nn.LeakyReLU() default negative slope


def _leaky(x):
    return jnp.where(x >= 0, x, NEG_SLOPE * x)


def _decoder_kernel(x_ref, b1_ref, b2_ref, o_ref, y_ref, *, H, W, Cin, Cout,
                    compute_dtype):
    """Fused conv1 + LeakyReLU + PixelShuffle(2) + conv2 + LeakyReLU, one image.

    x_ref : (1, H+2, W*Cin)        row-padded, channel-minor input slab (f32)
    b1_ref: (3, W*Cin, 4*W*Cin)    banded conv1 weights, lanes = (dh, w, dw, c)
    b2_ref: (3, 2W*Cin, 2W*Cout)   banded conv2 weights, lanes = (w, o)
    o_ref : (1, H, 2*(2W*Cout))    output: [even-row | odd-row] per lane group
    y_ref : (H+2, 4*W*Cin)         f32 scratch: row-padded conv1 activation
    """
    f32 = jnp.float32
    cdt = compute_dtype
    half = 2 * W * Cin      # lanes of one PixelShuffle phase (= 2W*Cin)
    W2C = 2 * W * Cout      # lanes of one upsampled output row (= 2W*Cout)

    # ---- conv1 (Cin -> 4*Cin): 3 banded MXU matmuls, f32 accumulation ------
    def c1(dy):
        return jnp.dot(x_ref[0, dy:dy + H, :].astype(cdt), b1_ref[dy],
                       preferred_element_type=f32)

    y1 = _leaky(c1(0) + c1(1) + c1(2))              # (H, 2*half), f32

    # Stage the activation with zero pad rows (conv2 "same" padding).  Pad rows
    # are rewritten every step on purpose: the scratch is per-core, so an
    # "only on program_id == 0" init is unsafe with a "parallel" grid axis.
    zrow = jnp.zeros((1, 2 * half), f32)
    y_ref[0:1, :] = zrow
    y_ref[H + 1:H + 2, :] = zrow
    y_ref[1:H + 1, :] = y1

    # ---- PixelShuffle(2) + conv2 (Cin -> Cout), shuffle folded away --------
    # Shuffled rows would be z[2h] = y1[h, :half] and z[2h+1] = y1[h, half:],
    # so even/odd output rows come straight from the un-shuffled slabs:
    #   out[2h]   = b2[0]·z[2h-1] + b2[1]·z[2h]   + b2[2]·z[2h+1]
    #   out[2h+1] = b2[0]·z[2h]   + b2[1]·z[2h+1] + b2[2]·z[2h+2]
    p0 = y_ref[1:H + 1, 0:half].astype(cdt)         # z[2h]
    p1 = y_ref[1:H + 1, half:].astype(cdt)          # z[2h+1]
    p1m = y_ref[0:H, half:].astype(cdt)             # z[2h-1]  (z[-1] = 0 pad)
    p0p = y_ref[2:H + 2, 0:half].astype(cdt)        # z[2h+2]  (z[2H] = 0 pad)

    def c2(lhs, dy):
        return jnp.dot(lhs, b2_ref[dy], preferred_element_type=f32)

    out_even = _leaky(c2(p1m, 0) + c2(p0, 1) + c2(p1, 2))    # output rows 2h
    out_odd = _leaky(c2(p0, 0) + c2(p1, 1) + c2(p0p, 2))     # output rows 2h+1

    o_ref[0, :, 0:W2C] = out_even.astype(o_ref.dtype)
    o_ref[0, :, W2C:2 * W2C] = out_odd.astype(o_ref.dtype)


def _band_conv1(w1_oihw, W):
    """OIHW [4*Cin, Cin, 3, 3] -> banded [3, W*Cin, 4*W*Cin], cols=(dh,w,dw,c)."""
    C4, Cin, KH, KW = w1_oihw.shape
    # oc = c*4 + dh*2 + dw (PyTorch PixelShuffle channel grouping)
    wt = w1_oihw.reshape(Cin, 2, 2, Cin, KH, KW).transpose(4, 5, 3, 1, 2, 0)
    # wt[dy, dx, ci, dh, dw, c]
    idx = jnp.arange(W)
    shift = (idx[None, :, None] ==
             idx[None, None, :] + jnp.arange(KW)[:, None, None] - (KW // 2))
    band = jnp.einsum('xsw,yxiabc->ysiawbc', shift.astype(w1_oihw.dtype), wt)
    return band.reshape(KH, W * Cin, 2 * W * 2 * Cin)


def _band_conv2(w2_oihw, W2):
    """OIHW [Cout, Cin, 3, 3] -> banded [3, W2*Cin, W2*Cout], cols=(w,o)."""
    Cout, Cin, KH, KW = w2_oihw.shape
    wt = w2_oihw.transpose(2, 3, 1, 0)             # [dy, dx, ci, o]
    idx = jnp.arange(W2)
    shift = (idx[None, :, None] ==
             idx[None, None, :] + jnp.arange(KW)[:, None, None] - (KW // 2))
    band = jnp.einsum('xsw,yxio->ysiwo', shift.astype(w2_oihw.dtype), wt)
    return band.reshape(KH, W2 * Cin, W2 * Cout)


def decoder_block(x_nchw, w1_oihw, w2_oihw, *, weight_dtype=jnp.bfloat16):
    """DecoderBlock forward: [N, Cin, H, W] -> [N, Cout, 2H, 2W] (weights OIHW)."""
    N, Cin, H, W = x_nchw.shape
    Cout = w2_oihw.shape[0]
    H2, W2 = 2 * H, 2 * W
    WC, W2C = W * Cin, W2 * Cout

    # Banded weights (tiny at toy W; hoist/precompute once per model in real use).
    b1 = _band_conv1(w1_oihw, W).astype(weight_dtype)     # [3, W*Cin, 4*W*Cin]
    b2 = _band_conv2(w2_oihw, W2).astype(weight_dtype)    # [3, 2W*Cin, 2W*Cout]

    # NCHW -> row-padded channel-minor slab [N, H+2, W*Cin]; XLA fuses the pad
    # into the same transpose pass.  TODO(synk): at production sizes also ship
    # this slab in bf16 to halve the activation DMA bytes.
    xr = jnp.transpose(x_nchw, (0, 2, 3, 1)).reshape(N, H, WC)
    xr = jnp.pad(xr, ((0, 0), (1, 1), (0, 0)))

    out_flat = pl.pallas_call(
        functools.partial(_decoder_kernel, H=H, W=W, Cin=Cin, Cout=Cout,
                          compute_dtype=weight_dtype),
        out_shape=jax.ShapeDtypeStruct((N, H, 2 * W2C), x_nchw.dtype),
        grid_spec=pltpu.PrefetchScalarGridSpec(
            num_scalar_prefetch=0,
            grid=(N,),
            in_specs=[
                pl.BlockSpec((1, H + 2, WC), lambda n: (n, 0, 0)),
                pl.BlockSpec((3, WC, 4 * WC), lambda n: (0, 0, 0)),
                pl.BlockSpec((3, 2 * WC, W2C), lambda n: (0, 0, 0)),
            ],
            out_specs=pl.BlockSpec((1, H, 2 * W2C), lambda n: (n, 0, 0)),
            scratch_shapes=[pltpu.VMEM((H + 2, 4 * WC), jnp.float32)],
        ),
        compiler_params=pltpu.CompilerParams(
            dimension_semantics=("parallel",),
            vmem_limit_bytes=32 * 1024 * 1024),
    )(xr, b1, b2)

    # [N, H, 2*(2W*Cout)]: per source row h, the two upsampled rows (2h, 2h+1)
    # sit side by side in lanes.  One XLA transpose (the same pass that did the
    # NHWC->NCHW conversion before) de-interleaves rows and converts to NCHW.
    out = out_flat.reshape(N, H, 2, W2, Cout).transpose(0, 4, 1, 2, 3)
    return out.reshape(N, Cout, H2, W2)


# ------------------------- reference (plain JAX) -------------------------
def _ref_decoder_block(x_nchw, w1_oihw, w2_oihw):
    def conv(x, w):
        return jax.lax.conv_general_dilated(
            x, w, window_strides=(1, 1), padding=((1, 1), (1, 1)),
            dimension_numbers=("NCHW", "OIHW", "NCHW"))

    y = _leaky(conv(x_nchw, w1_oihw))
    N, C4, H, W = y.shape
    C = C4 // 4
    # PyTorch PixelShuffle(2): out[n,c,2h+i,2w+j] = in[n, c*4 + i*2 + j, h, w]
    y = y.reshape(N, C, 2, 2, H, W).transpose(0, 1, 4, 2, 5, 3)
    y = y.reshape(N, C, 2 * H, 2 * W)
    return _leaky(conv(y, w2_oihw))


if __name__ == "__main__":
    N, Cin, H, W = 2, 4, 16, 16
    Cout = 8

    key = jax.random.PRNGKey(0)
    kx, k1, k2 = jax.random.split(key, 3)

    x = jax.random.normal(kx, (N, Cin, H, W), jnp.float32)
    # PyTorch-layout (OIHW) weights, no bias (bias=False in the module).
    w1 = 0.1 * jax.random.normal(k1, (4 * Cin, Cin, 3, 3), jnp.float32)
    w2 = 0.1 * jax.random.normal(k2, (Cout, Cin, 3, 3), jnp.float32)

    ref = jax.block_until_ready(_ref_decoder_block(x, w1, w2))

    # Production path: bf16 MXU operands, f32 accumulation (loosened tolerance).
    fwd = jax.jit(decoder_block)
    out = jax.block_until_ready(fwd(x, w1, w2))
    assert out.shape == (N, Cout, 2 * H, 2 * W), out.shape
    err_bf16 = float(jnp.max(jnp.abs(out - ref)))
    assert err_bf16 < 5e-2, f"bf16-path max err {err_bf16}"

    # Structural check: the same kernel with f32 weights matches tightly.
    fwd32 = jax.jit(functools.partial(decoder_block, weight_dtype=jnp.float32))
    out32 = jax.block_until_ready(fwd32(x, w1, w2))
    err_f32 = float(jnp.max(jnp.abs(out32 - ref)))
    assert err_f32 < 1e-3, f"f32-path max err {err_f32}"

    print("KERNEL_OK")
</pallas_src>

<mosaic_0001>
module attributes {stable_mosaic.version = 11 : i64} {
  func.func @_decoder_kernel(%arg0: i32, %arg1: memref<1x18x64xf32, #tpu.memory_space<vmem>>, %arg2: memref<3x64x256xbf16, #tpu.memory_space<vmem>>, %arg3: memref<3x128x256xbf16, #tpu.memory_space<vmem>>, %arg4: memref<1x16x512xf32, #tpu.memory_space<vmem>>, %arg5: memref<18x256xf32, #tpu.memory_space<vmem>>) attributes {dimension_semantics = [#tpu.dimension_semantics<parallel>], iteration_bounds = array<i64: 2>, scalar_prefetch = 0 : i64, scratch_operands = 1 : i64, tpu.core_type = #tpu.core_type<tc>, window_params = [{transform_indices = @transform_0, window_bounds = array<i64: 1, 18, 64>}, {pipeline_mode = #tpu.pipeline_mode<synchronous>, transform_indices = @transform_1, window_bounds = array<i64: 3, 64, 256>}, {pipeline_mode = #tpu.pipeline_mode<synchronous>, transform_indices = @transform_2, window_bounds = array<i64: 3, 128, 256>}, {transform_indices = @transform_3, window_bounds = array<i64: 1, 16, 512>}]} {
    %c0 = arith.constant 0 : index
    %c0_0 = arith.constant 0 : index
    %c0_1 = arith.constant 0 : index
    %0 = vector.load %arg1[%c0, %c0_0, %c0_1] : memref<1x18x64xf32, #tpu.memory_space<vmem>>, vector<1x16x64xf32>
    %1 = vector.shape_cast %0 : vector<1x16x64xf32> to vector<16x64xf32>
    %2 = arith.truncf %1 : vector<16x64xf32> to vector<16x64xbf16>
    %c0_2 = arith.constant 0 : index
    %c0_3 = arith.constant 0 : index
    %c0_4 = arith.constant 0 : index
    %3 = vector.load %arg2[%c0_2, %c0_3, %c0_4] : memref<3x64x256xbf16, #tpu.memory_space<vmem>>, vector<1x64x256xbf16>
    %4 = vector.shape_cast %3 : vector<1x64x256xbf16> to vector<64x256xbf16>
    %cst = arith.constant dense<0.000000e+00> : vector<16x256xf32>
    %5 = tpu.matmul %2, %4, %cst {dimension_numbers = #tpu.dot_dimension_numbers<[1], [0], [0], [1], [0, 0, 1, 1], [], []>} : vector<16x64xbf16>, vector<64x256xbf16>, vector<16x256xf32> -> vector<16x256xf32>
    %c0_5 = arith.constant 0 : index
    %c1 = arith.constant 1 : index
    %c0_6 = arith.constant 0 : index
    %6 = vector.load %arg1[%c0_5, %c1, %c0_6] : memref<1x18x64xf32, #tpu.memory_space<vmem>>, vector<1x16x64xf32>
    %7 = vector.shape_cast %6 : vector<1x16x64xf32> to vector<16x64xf32>
    %8 = arith.truncf %7 : vector<16x64xf32> to vector<16x64xbf16>
    %c1_7 = arith.constant 1 : index
    %c0_8 = arith.constant 0 : index
    %c0_9 = arith.constant 0 : index
    %9 = vector.load %arg2[%c1_7, %c0_8, %c0_9] : memref<3x64x256xbf16, #tpu.memory_space<vmem>>, vector<1x64x256xbf16>
    %10 = vector.shape_cast %9 : vector<1x64x256xbf16> to vector<64x256xbf16>
    %cst_10 = arith.constant dense<0.000000e+00> : vector<16x256xf32>
    %11 = tpu.matmul %8, %10, %cst_10 {dimension_numbers = #tpu.dot_dimension_numbers<[1], [0], [0], [1], [0, 0, 1, 1], [], []>} : vector<16x64xbf16>, vector<64x256xbf16>, vector<16x256xf32> -> vector<16x256xf32>
    %12 = arith.addf %5, %11 : vector<16x256xf32>
    %c0_11 = arith.constant 0 : index
    %c2 = arith.constant 2 : index
    %c0_12 = arith.constant 0 : index
    %13 = vector.load %arg1[%c0_11, %c2, %c0_12] : memref<1x18x64xf32, #tpu.memory_space<vmem>>, vector<1x16x64xf32>
    %14 = vector.shape_cast %13 : vector<1x16x64xf32> to vector<16x64xf32>
    %15 = arith.truncf %14 : vector<16x64xf32> to vector<16x64xbf16>
    %c2_13 = arith.constant 2 : index
    %c0_14 = arith.constant 0 : index
    %c0_15 = arith.constant 0 : index
    %16 = vector.load %arg2[%c2_13, %c0_14, %c0_15] : memref<3x64x256xbf16, #tpu.memory_space<vmem>>, vector<1x64x256xbf16>
    %17 = vector.shape_cast %16 : vector<1x64x256xbf16> to vector<64x256xbf16>
    %cst_16 = arith.constant dense<0.000000e+00> : vector<16x256xf32>
    %18 = tpu.matmul %15, %17, %cst_16 {dimension_numbers = #tpu.dot_dimension_numbers<[1], [0], [0], [1], [0, 0, 1, 1], [], []>} : vector<16x64xbf16>, vector<64x256xbf16>, vector<16x256xf32> -> vector<16x256xf32>
    %19 = arith.addf %12, %18 : vector<16x256xf32>
    %cst_17 = arith.constant 0.000000e+00 : f32
    %20 = vector.broadcast %cst_17 : f32 to vector<16x256xf32>
    %21 = arith.cmpf oge, %19, %20 : vector<16x256xf32>
    %cst_18 = arith.constant 0.00999999977 : f32
    %22 = vector.broadcast %cst_18 : f32 to vector<16x256xf32>
    %23 = arith.mulf %22, %19 : vector<16x256xf32>
    %24 = arith.select %21, %19, %23 : vector<16x256xi1>, vector<16x256xf32>
    %cst_19 = arith.constant 0.000000e+00 : f32
    %25 = vector.broadcast %cst_19 : f32 to vector<1x256xf32>
    %c0_20 = arith.constant 0 : index
    %c0_21 = arith.constant 0 : index
    %26 = vector.load %arg5[%c0_20, %c0_21] : memref<18x256xf32, #tpu.memory_space<vmem>>, vector<1x256xf32>
    tpu.vector_store %arg5[%c0_20, %c0_21], %25 {strides = array<i32>} : memref<18x256xf32, #tpu.memory_space<vmem>>, vector<1x256xf32>,
    %c17 = arith.constant 17 : index
    %c0_22 = arith.constant 0 : index
    %27 = vector.load %arg5[%c17, %c0_22] : memref<18x256xf32, #tpu.memory_space<vmem>>, vector<1x256xf32>
    tpu.vector_store %arg5[%c17, %c0_22], %25 {strides = array<i32>} : memref<18x256xf32, #tpu.memory_space<vmem>>, vector<1x256xf32>,
    %c1_23 = arith.constant 1 : index
    %c0_24 = arith.constant 0 : index
    %28 = vector.load %arg5[%c1_23, %c0_24] : memref<18x256xf32, #tpu.memory_space<vmem>>, vector<16x256xf32>
    tpu.vector_store %arg5[%c1_23, %c0_24], %24 {strides = array<i32>} : memref<18x256xf32, #tpu.memory_space<vmem>>, vector<16x256xf32>,
    %c1_25 = arith.constant 1 : index
    %c0_26 = arith.constant 0 : index
    %29 = vector.load %arg5[%c1_25, %c0_26] : memref<18x256xf32, #tpu.memory_space<vmem>>, vector<16x128xf32>
    %30 = arith.truncf %29 : vector<16x128xf32> to vector<16x128xbf16>
    %c1_27 = arith.constant 1 : index
    %c128 = arith.constant 128 : index
    %31 = vector.load %arg5[%c1_27, %c128] : memref<18x256xf32, #tpu.memory_space<vmem>>, vector<16x128xf32>
    %32 = arith.truncf %31 : vector<16x128xf32> to vector<16x128xbf16>
    %c0_28 = arith.constant 0 : index
    %c128_29 = arith.constant 128 : index
    %33 = vector.load %arg5[%c0_28, %c128_29] : memref<18x256xf32, #tpu.memory_space<vmem>>, vector<16x128xf32>
    %34 = arith.truncf %33 : vector<16x128xf32> to vector<16x128xbf16>
    %c2_30 = arith.constant 2 : index
    %c0_31 = arith.constant 0 : index
    %35 = vector.load %arg5[%c2_30, %c0_31] : memref<18x256xf32, #tpu.memory_space<vmem>>, vector<16x128xf32>
    %36 = arith.truncf %35 : vector<16x128xf32> to vector<16x128xbf16>
    %c0_32 = arith.constant 0 : index
    %c0_33 = arith.constant 0 : index
    %c0_34 = arith.constant 0 : index
    %37 = vector.load %arg3[%c0_32, %c0_33, %c0_34] : memref<3x128x256xbf16, #tpu.memory_space<vmem>>, vector<1x128x256xbf16>
    %38 = vector.shape_cast %37 : vector<1x128x256xbf16> to vector<128x256xbf16>
    %cst_35 = arith.constant dense<0.000000e+00> : vector<16x256xf32>
    %39 = tpu.matmul %34, %38, %cst_35 {dimension_numbers = #tpu.dot_dimension_numbers<[1], [0], [0], [1], [0, 0, 1, 1], [], []>} : vector<16x128xbf16>, vector<128x256xbf16>, vector<16x256xf32> -> vector<16x256xf32>
    %c1_36 = arith.constant 1 : index
    %c0_37 = arith.constant 0 : index
    %c0_38 = arith.constant 0 : index
    %40 = vector.load %arg3[%c1_36, %c0_37, %c0_38] : memref<3x128x256xbf16, #tpu.memory_space<vmem>>, vector<1x128x256xbf16>
    %41 = vector.shape_cast %40 : vector<1x128x256xbf16> to vector<128x256xbf16>
    %cst_39 = arith.constant dense<0.000000e+00> : vector<16x256xf32>
    %42 = tpu.matmul %30, %41, %cst_39 {dimension_numbers = #tpu.dot_dimension_numbers<[1], [0], [0], [1], [0, 0, 1, 1], [], []>} : vector<16x128xbf16>, vector<128x256xbf16>, vector<16x256xf32> -> vector<16x256xf32>
    %43 = arith.addf %39, %42 : vector<16x256xf32>
    %c2_40 = arith.constant 2 : index
    %c0_41 = arith.constant 0 : index
    %c0_42 = arith.constant 0 : index
    %44 = vector.load %arg3[%c2_40, %c0_41, %c0_42] : memref<3x128x256xbf16, #tpu.memory_space<vmem>>, vector<1x128x256xbf16>
    %45 = vector.shape_cast %44 : vector<1x128x256xbf16> to vector<128x256xbf16>
    %cst_43 = arith.constant dense<0.000000e+00> : vector<16x256xf32>
    %46 = tpu.matmul %32, %45, %cst_43 {dimension_numbers = #tpu.dot_dimension_numbers<[1], [0], [0], [1], [0, 0, 1, 1], [], []>} : vector<16x128xbf16>, vector<128x256xbf16>, vector<16x256xf32> -> vector<16x256xf32>
    %47 = arith.addf %43, %46 : vector<16x256xf32>
    %cst_44 = arith.constant 0.000000e+00 : f32
    %48 = vector.broadcast %cst_44 : f32 to vector<16x256xf32>
    %49 = arith.cmpf oge, %47, %48 : vector<16x256xf32>
    %cst_45 = arith.constant 0.00999999977 : f32
    %50 = vector.broadcast %cst_45 : f32 to vector<16x256xf32>
    %51 = arith.mulf %50, %47 : vector<16x256xf32>
    %52 = arith.select %49, %47, %51 : vector<16x256xi1>, vector<16x256xf32>
    %c0_46 = arith.constant 0 : index
    %c0_47 = arith.constant 0 : index
    %c0_48 = arith.constant 0 : index
    %53 = vector.load %arg3[%c0_46, %c0_47, %c0_48] : memref<3x128x256xbf16, #tpu.memory_space<vmem>>, vector<1x128x256xbf16>
    %54 = vector.shape_cast %53 : vector<1x128x256xbf16> to vector<128x256xbf16>
    %cst_49 = arith.constant dense<0.000000e+00> : vector<16x256xf32>
    %55 = tpu.matmul %30, %54, %cst_49 {dimension_numbers = #tpu.dot_dimension_numbers<[1], [0], [0], [1], [0, 0, 1, 1], [], []>} : vector<16x128xbf16>, vector<128x256xbf16>, vector<16x256xf32> -> vector<16x256xf32>
    %c1_50 = arith.constant 1 : index
    %c0_51 = arith.constant 0 : index
    %c0_52 = arith.constant 0 : index
    %56 = vector.load %arg3[%c1_50, %c0_51, %c0_52] : memref<3x128x256xbf16, #tpu.memory_space<vmem>>, vector<1x128x256xbf16>
    %57 = vector.shape_cast %56 : vector<1x128x256xbf16> to vector<128x256xbf16>
    %cst_53 = arith.constant dense<0.000000e+00> : vector<16x256xf32>
    %58 = tpu.matmul %32, %57, %cst_53 {dimension_numbers = #tpu.dot_dimension_numbers<[1], [0], [0], [1], [0, 0, 1, 1], [], []>} : vector<16x128xbf16>, vector<128x256xbf16>, vector<16x256xf32> -> vector<16x256xf32>
    %59 = arith.addf %55, %58 : vector<16x256xf32>
    %c2_54 = arith.constant 2 : index
    %c0_55 = arith.constant 0 : index
    %c0_56 = arith.constant 0 : index
    %60 = vector.load %arg3[%c2_54, %c0_55, %c0_56] : memref<3x128x256xbf16, #tpu.memory_space<vmem>>, vector<1x128x256xbf16>
    %61 = vector.shape_cast %60 : vector<1x128x256xbf16> to vector<128x256xbf16>
    %cst_57 = arith.constant dense<0.000000e+00> : vector<16x256xf32>
    %62 = tpu.matmul %36, %61, %cst_57 {dimension_numbers = #tpu.dot_dimension_numbers<[1], [0], [0], [1], [0, 0, 1, 1], [], []>} : vector<16x128xbf16>, vector<128x256xbf16>, vector<16x256xf32> -> vector<16x256xf32>
    %63 = arith.addf %59, %62 : vector<16x256xf32>
    %cst_58 = arith.constant 0.000000e+00 : f32
    %64 = vector.broadcast %cst_58 : f32 to vector<16x256xf32>
    %65 = arith.cmpf oge, %63, %64 : vector<16x256xf32>
    %cst_59 = arith.constant 0.00999999977 : f32
    %66 = vector.broadcast %cst_59 : f32 to vector<16x256xf32>
    %67 = arith.mulf %66, %63 : vector<16x256xf32>
    %68 = arith.select %65, %63, %67 : vector<16x256xi1>, vector<16x256xf32>
    %c0_60 = arith.constant 0 : index
    %c0_61 = arith.constant 0 : index
    %c0_62 = arith.constant 0 : index
    %69 = vector.load %arg4[%c0_60, %c0_61, %c0_62] : memref<1x16x512xf32, #tpu.memory_space<vmem>>, vector<1x16x256xf32>
    %70 = vector.shape_cast %69 : vector<1x16x256xf32> to vector<16x256xf32>
    %71 = vector.shape_cast %52 : vector<16x256xf32> to vector<1x16x256xf32>
    tpu.vector_store %arg4[%c0_60, %c0_61, %c0_62], %71 {strides = array<i32>} : memref<1x16x512xf32, #tpu.memory_space<vmem>>, vector<1x16x256xf32>,
    %c0_63 = arith.constant 0 : index
    %c0_64 = arith.constant 0 : index
    %c256 = arith.constant 256 : index
    %72 = vector.load %arg4[%c0_63, %c0_64, %c256] : memref<1x16x512xf32, #tpu.memory_space<vmem>>, vector<1x16x256xf32>
    %73 = vector.shape_cast %72 : vector<1x16x256xf32> to vector<16x256xf32>
    %74 = vector.shape_cast %68 : vector<16x256xf32> to vector<1x16x256xf32>
    tpu.vector_store %arg4[%c0_63, %c0_64, %c256], %74 {strides = array<i32>} : memref<1x16x512xf32, #tpu.memory_space<vmem>>, vector<1x16x256xf32>,
    return
  }
  func.func @transform_0(%arg0: i32) -> (i32, i32, i32) {
    %c0_i32 = arith.constant 0 : i32
    %c0_i32_0 = arith.constant 0 : i32
    %c0_i32_1 = arith.constant 0 : i32
    return %arg0, %c0_i32, %c0_i32_0 : i32, i32, i32
  }
  func.func @transform_1(%arg0: i32) -> (i32, i32, i32) {
    %c0_i32 = arith.constant 0 : i32
    %c0_i32_0 = arith.constant 0 : i32
    %c0_i32_1 = arith.constant 0 : i32
    %c0_i32_2 = arith.constant 0 : i32
    return %c0_i32, %c0_i32_0, %c0_i32_1 : i32, i32, i32
  }
  func.func @transform_2(%arg0: i32) -> (i32, i32, i32) {
    %c0_i32 = arith.constant 0 : i32
    %c0_i32_0 = arith.constant 0 : i32
    %c0_i32_1 = arith.constant 0 : i32
    %c0_i32_2 = arith.constant 0 : i32
    return %c0_i32, %c0_i32_0, %c0_i32_1 : i32, i32, i32
  }
  func.func @transform_3(%arg0: i32) -> (i32, i32, i32) {
    %c0_i32 = arith.constant 0 : i32
    %c0_i32_0 = arith.constant 0 : i32
    %c0_i32_1 = arith.constant 0 : i32
    return %arg0, %c0_i32, %c0_i32_0 : i32, i32, i32
  }
}

</mosaic_0001>

<bundles_post_ra>
// kernel: decoder_block.1
= control target key start
LH: loop header
LB: loop body
LE: loop exit
PB: predicated region body
PF: predicated region fallthrough
CT: control target
= control target key end

     0   :  { %s1514_s12 = smov 0   ;;  %s1793_s0 = inlined_call_operand.vmem [shape: f32[2,18,64], index: 0, kind: input, shape index: {}]   ;;  %s1794_s1 = inlined_call_operand.vmem [shape: bf16[3,64,256], index: 1, kind: input, shape index: {}]   ;;  %s1795_s2 = inlined_call_operand.vmem [shape: bf16[3,128,256], index: 2, kind: input, shape index: {}]   ;;  %s1796_s3 = inlined_call_operand.vmem [shape: f32[2,16,512], index: 3, kind: output, shape index: {}]  }
   0x1 LB: > { %s1207_s13 = sadd.s32 4294967295, %s1490_s12   ;;  %p1211_p0 = scmp.ge.s32.totalorder %s1490_s12, 1  ;;  %s1490_s12 = sphi %s1514_s12, %s13_s12  }
   0x2   : > { %p137_p1 = scmp.lt.s32.totalorder %s1490_s12, 3 }
   0x4   : > { %p138_p2 = pnand %p1211_p0, %p137_p1 }
   0x5   : > { %v1376_v0 = vld [vmem:[%s1794_s1 + $0x4] ss:$8 sps:$4 sm:$0xff] (!%p138_p2)   ;;  %p161_p3 = scmp.lt.s32.totalorder (!%p138_p2), %s1207_s13, 1  ;;  %v1378_v1 = vld [vmem:[%s1794_s1] ss:$8 sps:$4 sm:$0xff] (!%p138_p2)   ;;  %v1492_v2 = vmov (!%p138_p2), 0   ;;  %v482_v44 = vlaneseq (!%p138_p2) }
   0x6   : > { %141 = sbr.rel (%p138_p2) target bundleno = 561 (0x231), region = 32  ;;  %357 = vmatprep.mubr.bf16.mxu0 (!%p138_p2), %v1492_v2  ;;  %271 = vmatprep.mubr.bf16.mxu1 (!%p138_p2), %v1492_v2  ;;  %v1379_v3 = vld [vmem:[%s1794_s1 + $0x14] ss:$8 sps:$4 sm:$0xff] (!%p138_p2)   ;;  %v1381_v4 = vld [vmem:[%s1794_s1 + $0x10] ss:$8 sps:$4 sm:$0xff] (!%p138_p2)   ;;  %vm235_vm0 = vcmask (!%p138_p2), 523264  }
   0x7   : > { %325 = vmatprep.subr.bf16.mxu0 (!%p138_p2), %v1376_v0  ;;  %v1382_v5 = vld [vmem:[%s1794_s1 + $0x24] ss:$8 sps:$4 sm:$0xff] (!%p138_p2)   ;;  %v1390_v7 = vld [vmem:[%s1794_s1 + $0x40] ss:$8 sps:$4 sm:$0xff] (!%p138_p2)   ;;  %v1385_v9 = vld [vmem:[%s1794_s1 + $0x34] ss:$8 sps:$4 sm:$0xff] (!%p138_p2)  }
   0x8   : > { %326 = vmatpush1.bf16.msra.mxu0 (!%p138_p2), %v1378_v1  ;;  %v1387_v6 = vld [vmem:[%s1794_s1 + $0x44] ss:$8 sps:$4 sm:$0xff] (!%p138_p2)   ;;  %v1384_v8 = vld [vmem:[%s1794_s1 + $0x20] ss:$8 sps:$4 sm:$0xff] (!%p138_p2)   ;;  %v1394_v10 = vld [vmem:[%s1794_s1 + $0x54] ss:$8 sps:$4 sm:$0xff] (!%p138_p2)  }
   0x9   : > { %327 = vmatprep.subr.bf16.mxu0 (!%p138_p2), %v1379_v3  ;;  %239 = vmatprep.subr.bf16.mxu1 (!%p138_p2), %v1387_v6  ;;  %v1389_v11 = vld [vmem:[%s1794_s1 + $0x30] ss:$8 sps:$4 sm:$0xff] (!%p138_p2)   ;;  %v1393_v13 = vld [vmem:[%s1794_s1 + $0x84] ss:$8 sps:$4 sm:$0xff] (!%p138_p2)   ;;  %v1402_v17 = vld [vmem:[%s1794_s1 + $0x60] ss:$8 sps:$4 sm:$0xff] (!%p138_p2)  }
   0xa   : > { %240 = vmatpush1.bf16.msra.mxu1 (!%p138_p2), %v1390_v7  ;;  %v1396_v12 = vld [vmem:[%s1794_s1 + $0x50] ss:$8 sps:$4 sm:$0xff] (!%p138_p2)   ;;  %v1400_v16 = vld [vmem:[%s1794_s1 + $0x64] ss:$8 sps:$4 sm:$0xff] (!%p138_p2)   ;;  %v1406_v19 = vld [vmem:[%s1794_s1 + $0x74] ss:$8 sps:$4 sm:$0xff] (!%p138_p2)  }
   0xb   : > { %241 = vmatprep.subr.bf16.mxu1 (!%p138_p2), %v1394_v10  ;;  %v1391_v20 = vld [vmem:[%s1794_s1 + $0x80] ss:$8 sps:$4 sm:$0xff] (!%p138_p2)   ;;  %v1399_v21 = vld [vmem:[%s1794_s1 + $0x94] ss:$8 sps:$4 sm:$0xff] (!%p138_p2)   ;;  %v1408_v22 = vld [vmem:[%s1794_s1 + $0x70] ss:$8 sps:$4 sm:$0xff] (!%p138_p2)  }
   0xc   : > { %328 = vmatpush1.bf16.msra.mxu0 (!%p138_p2), %v1381_v4  ;;  %v1397_v24 = vld [vmem:[%s1794_s1 + $0x90] ss:$8 sps:$4 sm:$0xff] (!%p138_p2)   ;;  %v1405_v26 = vld [vmem:[%s1794_s1 + $0xa4] ss:$8 sps:$4 sm:$0xff] (!%p138_p2)   ;;  %v1412_v27 = vld [vmem:[%s1795_s2 + $0x80] ss:$8 sps:$4 sm:$0xff] (!%p138_p2)  }
   0xd   : > { %s1798_s13 = smov (!%p161_p3, %s1207_s13), 1  ;;  %329 = vmatprep.subr.bf16.mxu0 %v1382_v5  ;;  %v1414_v29 = vld [vmem:[%s1795_s2 + $0x84] ss:$8 sps:$4 sm:$0xff]   ;;  %v1403_v30 = vld [vmem:[%s1794_s1 + $0xa0] ss:$8 sps:$4 sm:$0xff]   ;;  %vm484_vm1 = vcmp.lt.s32.totalorder %v482_v44, 256 }
   0xe   : > { %s1365_s24 = smul.u32 24, %s1798_s13  ;;  %242 = vmatpush1.bf16.msra.mxu1 %v1396_v12  ;;  %v1411_v31 = vld [vmem:[%s1794_s1 + $0xb4] ss:$8 sps:$4 sm:$0xff]   ;;  %v1409_v32 = vld [vmem:[%s1794_s1 + $0xb0] ss:$8 sps:$4 sm:$0xff]   ;;  %v1493_v46 = vmov 0.0  }
   0xf   : > { %243 = vmatprep.subr.bf16.mxu1 %v1400_v16  ;;  %v1415_v36 = vld [vmem:[%s1795_s2 + $0x90] ss:$8 sps:$4 sm:$0xff]   ;;  %v1417_v37 = vld [vmem:[%s1795_s2 + $0x94] ss:$8 sps:$4 sm:$0xff]   ;;  %v1420_v38 = vld [vmem:[%s1795_s2 + $0xa4] ss:$8 sps:$4 sm:$0xff]  }
  0x10   : > { %s1557_s8 = scalar_lea.vmem %s1793_s0, %s1365_s24  ;;  %330 = vmatpush1.bf16.msra.mxu0 %v1384_v8  ;;  %v1418_v39 = vld [vmem:[%s1795_s2 + $0xa0] ss:$8 sps:$4 sm:$0xff]   ;;  %v1423_v40 = vld [vmem:[%s1795_s2 + $0xb4] ss:$8 sps:$4 sm:$0xff]   ;;  %v1421_v41 = vld [vmem:[%s1795_s2 + $0xb0] ss:$8 sps:$4 sm:$0xff]  }
  0x11   : > { %v172_v14 = vld [vmem:[%s1557_s8] sm:$0xff]  ;;  %v173_v15 = vld [vmem:[%s1557_s8 + $0x8] sm:$0xff]  ;;  %331 = vmatprep.subr.bf16.mxu0 %v1385_v9  ;;  %v1429_v45 = vld [vmem:[%s1795_s2 + $0xd4] ss:$8 sps:$4 sm:$0xff]   ;;  %vm495_vm6 = vcmask 1040384   ;;  %vm1080_vm8 = vcmask 1046528  }
  0x12   : > { %v174_v18 = vpack.c.bf16 %v173_v15, %v172_v14  ;;  %244 = vmatpush1.bf16.msra.mxu1 %v1402_v17  ;;  %v183_v23 = vld [vmem:[%s1557_s8 + $0x1] sm:$0xff]  ;;  %v184_v25 = vld [vmem:[%s1557_s8 + $0x9] sm:$0xff]  ;;  %486 = vst.msk [vmem:[#allocation2] ss:$8 sm:$0x3] %vm484_vm1, %v1493_v46  ;;  %s1340_s11 = sshll.u32 %s1798_s13, 6 }
  0x13   : > { %245 = vmatprep.subr.bf16.mxu1 %v1406_v19  ;;  %v185_v28 = vpack.c.bf16 %v184_v25, %v183_v23  ;;  %v368_v33 = vld [vmem:[%s1557_s8 + $0x2] sm:$0xff]  ;;  %v369_v34 = vld [vmem:[%s1557_s8 + $0xa] sm:$0xff]  ;;  %489 = vst.msk [vmem:[#allocation2 + $0x21] ss:$8 sm:$0x3] %vm484_vm1, %v1493_v46  ;;  %s1780_s16 = scalar_lea.vmem %s1796_s3, %s1340_s11 }
  0x14   : > { %332 = vmatpush1.bf16.msra.mxu0 %v1389_v11  ;;  %v370_v35 = vpack.c.bf16 %v369_v34, %v368_v33  ;;  %v1426_v42 = vld [vmem:[%s1795_s2 + $0xc4] ss:$8 sps:$4 sm:$0xff]   ;;  %v1424_v43 = vld [vmem:[%s1795_s2 + $0xc0] ss:$8 sps:$4 sm:$0xff]   ;;  %v1427_v47 = vld [vmem:[%s1795_s2 + $0xd0] ss:$8 sps:$4 sm:$0xff]  }
  0x15   : > { %423 = vmatprep.subr.bf16.mxu0 %v1393_v13  ;;  %v1432_v48 = vld [vmem:[%s1795_s2 + $0xe4] ss:$8 sps:$4 sm:$0xff]   ;;  %v1430_v49 = vld [vmem:[%s1795_s2 + $0xe0] ss:$8 sps:$4 sm:$0xff]   ;;  %v1435_v50 = vld [vmem:[%s1795_s2 + $0xf4] ss:$8 sps:$4 sm:$0xff]  }
  0x16   : > { %246 = vmatpush1.bf16.msra.mxu1 %v1408_v22  ;;  %v1433_v51 = vld [vmem:[%s1795_s2 + $0xf0] ss:$8 sps:$4 sm:$0xff]   ;;  %v1438_v52 = vld [vmem:[%s1795_s2 + $0x4] ss:$8 sps:$4 sm:$0xff]   ;;  %vm563_vm7 = vsmask.f32 7424 }
  0x17   : > { %1240 = vmatmul.mubr.msk.bf16.vlgmr.msra.gmra.mrb[0].mxu0 %vm235_vm0, %v174_v18  ;;  %657 = vmatprep.subr.bf16.mxu1 %v1414_v29  ;;  %v1445_v44 = vld [vmem:[%s1795_s2 + $0x30] ss:$8 sps:$4 sm:$0xff]   ;;  %v1448_v46 = vld [vmem:[%s1795_s2 + $0x40] ss:$8 sps:$4 sm:$0xff]  }
  0x18   : > { %424 = vmatpush1.bf16.msra.mxu0 %v1391_v20  ;;  %455 = vmatprep.mubr.bf16.mxu0 %v1492_v2 }
  0x19   : > { %425 = vmatprep.subr.bf16.mxu0 %v1399_v21  ;;  %1231 = vmatmul.mubr.msk.bf16.vlgmr.msra.gmra.mrb[0].mxu1 %vm235_vm0, %v185_v28 }
  0x1a   : > { %658 = vmatpush1.bf16.msra.mxu1 %v1412_v27  ;;  %689 = vmatprep.mubr.bf16.mxu1 %v1492_v2 }
  0x1b   : > { %659 = vmatprep.subr.bf16.mxu1 %v1417_v37 }
  0x1c   : > { %426 = vmatpush1.bf16.msra.mxu0 %v1397_v24 }
  0x1d   : > { %427 = vmatprep.subr.bf16.mxu0 %v1405_v26 }
  0x1e   : > { %660 = vmatpush1.bf16.msra.mxu1 %v1415_v36 }
  0x1f   : > { %661 = vmatprep.subr.bf16.mxu1 %v1420_v38 }
  0x20   : > { %428 = vmatpush1.bf16.msra.mxu0 %v1403_v30 }
  0x21   : > { %429 = vmatprep.subr.bf16.mxu0 %v1411_v31 }
  0x22   : > { %662 = vmatpush1.bf16.msra.mxu1 %v1418_v39 }
  0x23   : > { %663 = vmatprep.subr.bf16.mxu1 %v1423_v40 }
  0x24   : > { %430 = vmatpush1.bf16.msra.mxu0 %v1409_v32  ;;  %v1436_v32 = vld [vmem:[%s1795_s2] ss:$8 sps:$4 sm:$0xff]  }
  0x25   : > { %992 = vmatprep.subr.bf16.mxu0 %v1414_v29 }
  0x26   : > { %664 = vmatpush1.bf16.msra.mxu1 %v1421_v41 }
  0x27   : > { %1257 = vmatmul.mubr.msk.bf16.vlgmr.msra.gmra.mrb[0].mxu0 %vm235_vm0, %v370_v35  ;;  %665 = vmatprep.subr.bf16.mxu1 %v1426_v42 }
  0x28   : > { %993 = vmatpush1.bf16.msra.mxu0 %v1412_v27  ;;  %1024 = vmatprep.mubr.bf16.mxu0 %v1492_v2 }
  0x29   : > { %994 = vmatprep.subr.bf16.mxu0 %v1417_v37  ;;  %v1441_v37 = vld [vmem:[%s1795_s2 + $0x14] ss:$8 sps:$4 sm:$0xff]  }
  0x2a   : > { %666 = vmatpush1.bf16.msra.mxu1 %v1424_v43 }
  0x2b   : > { %667 = vmatprep.subr.bf16.mxu1 %v1429_v45 }
  0x2c   : > { %995 = vmatpush1.bf16.msra.mxu0 %v1415_v36 }
  0x2d   : > { %996 = vmatprep.subr.bf16.mxu0 %v1420_v38 }
  0x2e   : > { %668 = vmatpush1.bf16.msra.mxu1 %v1427_v47 }
  0x2f   : > { %669 = vmatprep.subr.bf16.mxu1 %v1432_v48 }
  0x30   : > { %997 = vmatpush1.bf16.msra.mxu0 %v1418_v39 }
  0x31   : > { %998 = vmatprep.subr.bf16.mxu0 %v1423_v40  ;;  %v1439_v40 = vld [vmem:[%s1795_s2 + $0x10] ss:$8 sps:$4 sm:$0xff]  }
  0x32   : > { %670 = vmatpush1.bf16.msra.mxu1 %v1430_v49 }
  0x33   : > { %671 = vmatprep.subr.bf16.mxu1 %v1435_v50 }
  0x34   : > { %999 = vmatpush1.bf16.msra.mxu0 %v1421_v41  ;;  %v1444_v41 = vld [vmem:[%s1795_s2 + $0x24] ss:$8 sps:$4 sm:$0xff]  }
  0x35   : > { %1000 = vmatprep.subr.bf16.mxu0 %v1426_v42  ;;  %v1442_v42 = vld [vmem:[%s1795_s2 + $0x20] ss:$8 sps:$4 sm:$0xff]  }
  0x36   : > { %672 = vmatpush1.bf16.msra.mxu1 %v1433_v51 }
  0x37   : > { %780 = vmatprep.subr.bf16.mxu1 %v1438_v52 }
  0x38   : > { %1001 = vmatpush1.bf16.msra.mxu0 %v1424_v43  ;;  %v1447_v43 = vld [vmem:[%s1795_s2 + $0x34] ss:$8 sps:$4 sm:$0xff]  }
  0x39   : > { %1002 = vmatprep.subr.bf16.mxu0 %v1429_v45  ;;  %v1450_v45 = vld [vmem:[%s1795_s2 + $0x44] ss:$8 sps:$4 sm:$0xff]  }
  0x3c   : > { %1003 = vmatpush1.bf16.msra.mxu0 %v1427_v47  ;;  %v1453_v47 = vld [vmem:[%s1795_s2 + $0x54] ss:$8 sps:$4 sm:$0xff]  }
  0x3d   : > { %1004 = vmatprep.subr.bf16.mxu0 %v1432_v48  ;;  %v1451_v48 = vld [vmem:[%s1795_s2 + $0x50] ss:$8 sps:$4 sm:$0xff]  }
  0x40   : > { %1005 = vmatpush1.bf16.msra.mxu0 %v1430_v49  ;;  %v1456_v49 = vld [vmem:[%s1795_s2 + $0x64] ss:$8 sps:$4 sm:$0xff]  }
  0x41   : > { %1006 = vmatprep.subr.bf16.mxu0 %v1435_v50  ;;  %v1454_v50 = vld [vmem:[%s1795_s2 + $0x60] ss:$8 sps:$4 sm:$0xff]  }
  0x44   : > { %1007 = vmatpush1.bf16.msra.mxu0 %v1433_v51  ;;  %v1459_v51 = vld [vmem:[%s1795_s2 + $0x74] ss:$8 sps:$4 sm:$0xff]  }
  0x45   : > { %1035 = vmatprep.subr.bf16.mxu0 %v1438_v52  ;;  %v1457_v52 = vld [vmem:[%s1795_s2 + $0x70] ss:$8 sps:$4 sm:$0xff]  }
  0xec   : > { %v273_v53 = vpop.f32.mrb[0].mxu1 }
  0xed   : > { %v275_v54 = vpop.f32.mrb[1].mxu1 }
  0xee   : > { %v277_v55 = vpop.f32.mrb[2].mxu1 }
  0xef   : > { %v279_v56 = vpop.f32.mrb[3].mxu1 }
  0xfa   : > { %v457_v57 = vpop.f32.mrb[0].mxu0 }
  0xfb   : > { %v1341_v58 = vadd.f32 %v457_v57, %v273_v53  ;;  %v459_v59 = vpop.f32.mrb[1].mxu0  ;;  %v1462_v53 = vld [vmem:[%s1795_s2 + $0x104] ss:$8 sps:$4 sm:$0xff]   ;;  %v1465_v57 = vld [vmem:[%s1795_s2 + $0x114] ss:$8 sps:$4 sm:$0xff]  }
  0xfc   : > { %v1342_v60 = vadd.f32 %v459_v59, %v275_v54  ;;  %v461_v61 = vpop.f32.mrb[2].mxu0  ;;  %v1468_v59 = vld [vmem:[%s1795_s2 + $0x124] ss:$8 sps:$4 sm:$0xff]  }
  0xfd   : > { %vm470_vm2 = vcmp.ge.f32.partialorder %v1341_v58, 0.0  ;;  %v474_v62 = vmul.f32 0.01, %v1341_v58  ;;  %v1343_v63 = vadd.f32 %v461_v61, %v277_v55  ;;  %v463_v0 = vpop.f32.mrb[3].mxu0  ;;  %v1460_v55 = vld [vmem:[%s1795_s2 + $0x100] ss:$8 sps:$4 sm:$0xff]  }
  0xfe   : > { %vm471_vm3 = vcmp.ge.f32.partialorder %v1342_v60, 0.0  ;;  %v475_v1 = vmul.f32 0.01, %v1342_v60  ;;  %v1344_v3 = vadd.f32 %v463_v0, %v279_v56  ;;  %v1471_v61 = vld [vmem:[%s1795_s2 + $0x134] ss:$8 sps:$4 sm:$0xff]  }
  0xff   : > { %v478_v4 = vsel %vm470_vm2, %v1341_v58, %v474_v62  ;;  %vm472_vm4 = vcmp.ge.f32.partialorder %v1343_v63, 0.0  ;;  %v476_v5 = vmul.f32 0.01, %v1343_v63  ;;  %v1463_v58 = vld [vmem:[%s1795_s2 + $0x110] ss:$8 sps:$4 sm:$0xff]  }
 0x100   : > { %v496_v6 = vrot.slane %v478_v4, 7  ;;  %v479_v7 = vsel %vm471_vm3, %v1342_v60, %v475_v1  ;;  %vm473_vm5 = vcmp.ge.f32.partialorder %v1344_v3, 0.0  ;;  %v477_v8 = vmul.f32 0.01, %v1344_v3  ;;  %v1466_v60 = vld [vmem:[%s1795_s2 + $0x120] ss:$8 sps:$4 sm:$0xff]  }
 0x101   : > { %v497_v9 = vrot.slane %v479_v7, 7  ;;  %v480_v10 = vsel %vm472_vm4, %v1343_v63, %v476_v5  ;;  %v1469_v62 = vld [vmem:[%s1795_s2 + $0x130] ss:$8 sps:$4 sm:$0xff]   ;;  %v1472_v63 = vld [vmem:[%s1795_s2 + $0x140] ss:$8 sps:$4 sm:$0xff]  }
 0x102   : > { %508 = vst [vmem:[#allocation2] sm:$0xfe] %v496_v6  ;;  %v498_v11 = vrot.slane %v480_v10, 7  ;;  %v481_v12 = vsel %vm473_vm5, %v1344_v3, %v477_v8  ;;  %v1477_v0 = vld [vmem:[%s1795_s2 + $0x154] ss:$8 sps:$4 sm:$0xff]  }
 0x103   : > { %509 = vst [vmem:[#allocation2 + $0x8] sm:$0xfe] %v497_v9  ;;  %v500_v13 = vrot.slane %v481_v12, 7  ;;  %v1475_v1 = vld [vmem:[%s1795_s2 + $0x150] ss:$8 sps:$4 sm:$0xff]  }
 0x104   : > { %v1667_v14 = vsel %vm495_vm6, %v496_v6, %v498_v11  ;;  %512 = vst [vmem:[#allocation2 + $0x20] sm:$0x1] %v498_v11  ;;  %v1480_v3 = vld [vmem:[%s1795_s2 + $0x164] ss:$8 sps:$4 sm:$0xff]   ;;  %v1478_v4 = vld [vmem:[%s1795_s2 + $0x160] ss:$8 sps:$4 sm:$0xff]  }
 0x105   : > { %v1669_v15 = vsel %vm495_vm6, %v497_v9, %v500_v13  ;;  %513 = vst [vmem:[#allocation2 + $0x28] sm:$0x1] %v500_v13  ;;  %v1483_v6 = vld [vmem:[%s1795_s2 + $0x174] ss:$8 sps:$4 sm:$0xff]   ;;  %v1481_v9 = vld [vmem:[%s1795_s2 + $0x170] ss:$8 sps:$4 sm:$0xff]  }
 0x109   : > { %v514_v16 = vld [vmem:[#allocation2] sm:$0xfe] }
 0x10a   : > { %v517_v17 = vpack.c.bf16 %v1667_v14, %v514_v16  ;;  %v519_v18 = vld [vmem:[#allocation2 + $0x8] sm:$0xfe]  ;;  %v526_v7 = vld [vmem:[#allocation2] sm:$0xfc] }
 0x10b   : > { %v516_v19 = vld [vmem:[#allocation2 + $0x20] sm:$0x1]  ;;  %v522_v20 = vpack.c.bf16 %v1669_v15, %v519_v18  ;;  %v524_v54 = vld [vmem:[#allocation2 + $0x8] sm:$0xff]  ;;  %v528_v10 = vpack.c.bf16 %v1667_v14, %v526_v7 }
 0x10c   : > { %v518_v21 = vpack.c.bf16 %v516_v19, %v516_v19  ;;  %v567_v22 = vshll.u32 %v517_v17, 16  ;;  %v521_v23 = vld [vmem:[#allocation2 + $0x28] sm:$0x1]  ;;  %v565_v26 = vshrl.u32 %v517_v17, 16  ;;  %v525_v56 = vpack.c.bf16 %v1669_v15, %v524_v54  ;;  %v527_v5 = vld [vmem:[#allocation2 + $0x20] sm:$0x3] }
 0x10d   : > { %v523_v24 = vpack.c.bf16 %v521_v23, %v521_v23  ;;  %v843_v25 = vshll.u32 %v522_v20, 16  ;;  %v841_v29 = vshrl.u32 %v522_v20, 16  ;;  %v529_v8 = vpack.c.bf16 %v527_v5, %v527_v5 }
 0x10e   : > { %v569_v27 = vrot.slane %v567_v22, 1  ;;  %v572_v28 = vshll.u32 %v518_v21, 16  ;;  %v1081_v12 = vrot.slane %v528_v10, 1 }
 0x10f   : > { %v845_v30 = vrot.slane %v843_v25, 1  ;;  %v848_v31 = vshll.u32 %v523_v24, 16  ;;  %v1082_v11 = vrot.slane %v529_v8, 1 }
 0x110   : > { %v570_v33 = vor.u32 %v569_v27, %v565_v26  ;;  %v574_v34 = vrot.slane %v572_v28, 1 }
 0x111   : > { %v846_v35 = vor.u32 %v845_v30, %v841_v29  ;;  %v850_v36 = vrot.slane %v848_v31, 1  ;;  %v1083_v13 = vsel %vm1080_vm8, %v1081_v12, %v1082_v11 }
 0x112   : > { %v575_v38 = vsel %vm563_vm7, %v570_v33, %v574_v34 }
 0x113   : > { %690 = vmatmul.mubr.bf16.vlgmr.msra.gmra.mrb[4].mxu1 %v575_v38  ;;  %v1679_v39 = vsel %vm563_vm7, %v846_v35, %v850_v36 }
 0x114   : > { %781 = vmatpush1.bf16.msra.mxu1 %v1436_v32  ;;  %1025 = vmatmul.mubr.bf16.vlgmr.msra.gmra.mrb[4].mxu0 %v1679_v39 }
 0x115   : > { %1036 = vmatpush1.bf16.msra.mxu0 %v1436_v32  ;;  %782 = vmatprep.subr.bf16.mxu1 %v1441_v37 }
 0x116   : > { %1037 = vmatprep.subr.bf16.mxu0 %v1441_v37  ;;  %812 = vmatprep.mubr.bf16.mxu1 %v1492_v2 }
 0x117   : > { %1067 = vmatprep.mubr.bf16.mxu0 %v1492_v2 }
 0x118   : > { %783 = vmatpush1.bf16.msra.mxu1 %v1439_v40 }
 0x119   : > { %1038 = vmatpush1.bf16.msra.mxu0 %v1439_v40  ;;  %784 = vmatprep.subr.bf16.mxu1 %v1444_v41 }
 0x11a   : > { %1039 = vmatprep.subr.bf16.mxu0 %v1444_v41 }
 0x11c   : > { %785 = vmatpush1.bf16.msra.mxu1 %v1442_v42 }
 0x11d   : > { %1040 = vmatpush1.bf16.msra.mxu0 %v1442_v42  ;;  %786 = vmatprep.subr.bf16.mxu1 %v1447_v43 }
 0x11e   : > { %1041 = vmatprep.subr.bf16.mxu0 %v1447_v43 }
 0x120   : > { %787 = vmatpush1.bf16.msra.mxu1 %v1445_v44 }
 0x121   : > { %1042 = vmatpush1.bf16.msra.mxu0 %v1445_v44  ;;  %788 = vmatprep.subr.bf16.mxu1 %v1450_v45 }
 0x122   : > { %1043 = vmatprep.subr.bf16.mxu0 %v1450_v45 }
 0x124   : > { %789 = vmatpush1.bf16.msra.mxu1 %v1448_v46 }
 0x125   : > { %1044 = vmatpush1.bf16.msra.mxu0 %v1448_v46  ;;  %790 = vmatprep.subr.bf16.mxu1 %v1453_v47 }
 0x126   : > { %1045 = vmatprep.subr.bf16.mxu0 %v1453_v47 }
 0x128   : > { %791 = vmatpush1.bf16.msra.mxu1 %v1451_v48 }
 0x129   : > { %1046 = vmatpush1.bf16.msra.mxu0 %v1451_v48  ;;  %792 = vmatprep.subr.bf16.mxu1 %v1456_v49 }
 0x12a   : > { %1047 = vmatprep.subr.bf16.mxu0 %v1456_v49 }
 0x12c   : > { %793 = vmatpush1.bf16.msra.mxu1 %v1454_v50 }
 0x12d   : > { %1048 = vmatpush1.bf16.msra.mxu0 %v1454_v50  ;;  %794 = vmatprep.subr.bf16.mxu1 %v1459_v51 }
 0x12e   : > { %1049 = vmatprep.subr.bf16.mxu0 %v1459_v51 }
 0x130   : > { %795 = vmatpush1.bf16.msra.mxu1 %v1457_v52 }
 0x131   : > { %1050 = vmatpush1.bf16.msra.mxu0 %v1457_v52  ;;  %933 = vmatprep.subr.bf16.mxu1 %v1462_v53 }
 0x132   : > { %1085 = vmatprep.subr.bf16.mxu0 %v1462_v53 }
 0x133   : > { %813 = vmatmul.mubr.bf16.vlgmr.msra.gmra.mrb[4].mxu1 %v525_v56 }
 0x134   : > { %934 = vmatpush1.bf16.msra.mxu1 %v1460_v55  ;;  %1068 = vmatmul.mubr.bf16.vlgmr.msra.gmra.mrb[4].mxu0 %v575_v38 }
 0x135   : > { %1086 = vmatpush1.bf16.msra.mxu0 %v1460_v55  ;;  %935 = vmatprep.subr.bf16.mxu1 %v1465_v57 }
 0x136   : > { %1087 = vmatprep.subr.bf16.mxu0 %v1465_v57  ;;  %965 = vmatprep.mubr.bf16.mxu1 %v1492_v2 }
 0x137   : > { %1117 = vmatprep.mubr.bf16.mxu0 %v1492_v2  ;;  %v1474_v2 = vld [vmem:[%s1795_s2 + $0x144] ss:$8 sps:$4 sm:$0xff]  }
 0x138   : > { %936 = vmatpush1.bf16.msra.mxu1 %v1463_v58 }
 0x139   : > { %1088 = vmatpush1.bf16.msra.mxu0 %v1463_v58  ;;  %937 = vmatprep.subr.bf16.mxu1 %v1468_v59 }
 0x13a   : > { %1089 = vmatprep.subr.bf16.mxu0 %v1468_v59 }
 0x13c   : > { %938 = vmatpush1.bf16.msra.mxu1 %v1466_v60 }
 0x13d   : > { %1090 = vmatpush1.bf16.msra.mxu0 %v1466_v60  ;;  %939 = vmatprep.subr.bf16.mxu1 %v1471_v61 }
 0x13e   : > { %1091 = vmatprep.subr.bf16.mxu0 %v1471_v61 }
 0x140   : > { %940 = vmatpush1.bf16.msra.mxu1 %v1469_v62 }
 0x141   : > { %1092 = vmatpush1.bf16.msra.mxu0 %v1469_v62  ;;  %941 = vmatprep.subr.bf16.mxu1 %v1474_v2 }
 0x142   : > { %1093 = vmatprep.subr.bf16.mxu0 %v1474_v2 }
 0x144   : > { %942 = vmatpush1.bf16.msra.mxu1 %v1472_v63 }
 0x145   : > { %1094 = vmatpush1.bf16.msra.mxu0 %v1472_v63  ;;  %943 = vmatprep.subr.bf16.mxu1 %v1477_v0 }
 0x146   : > { %1095 = vmatprep.subr.bf16.mxu0 %v1477_v0 }
 0x148   : > { %944 = vmatpush1.bf16.msra.mxu1 %v1475_v1 }
 0x149   : > { %1096 = vmatpush1.bf16.msra.mxu0 %v1475_v1  ;;  %945 = vmatprep.subr.bf16.mxu1 %v1480_v3 }
 0x14a   : > { %1097 = vmatprep.subr.bf16.mxu0 %v1480_v3 }
 0x14c   : > { %946 = vmatpush1.bf16.msra.mxu1 %v1478_v4 }
 0x14d   : > { %1098 = vmatpush1.bf16.msra.mxu0 %v1478_v4  ;;  %947 = vmatprep.subr.bf16.mxu1 %v1483_v6 }
 0x14e   : > { %1099 = vmatprep.subr.bf16.mxu0 %v1483_v6 }
 0x150   : > { %948 = vmatpush1.bf16.msra.mxu1 %v1481_v9 }
 0x151   : > { %1100 = vmatpush1.bf16.msra.mxu0 %v1481_v9 }
 0x153   : > { %966 = vmatmul.mubr.bf16.vlgmr.msra.gmra.mrb[4].mxu1 %v1679_v39 }
 0x154   : > { %1118 = vmatmul.mubr.bf16.vlgmr.msra.gmra.mrb[4].mxu0 %v1083_v13 }
 0x226   : > { %v967_v15 = vpop.f32.mrb[4].mxu1 }
 0x227   : > { %vm980_vm9 = vcmp.ge.f32.partialorder %v967_v15, 0.0  ;;  %v984_v14 = vmul.f32 0.01, %v967_v15  ;;  %v969_v16 = vpop.f32.mrb[5].mxu1  ;;  %v1119_v17 = vpop.f32.mrb[4].mxu0 }
 0x228   : > { %vm981_vm10 = vcmp.ge.f32.partialorder %v969_v16, 0.0  ;;  %v985_v18 = vmul.f32 0.01, %v969_v16  ;;  %vm1132_vm11 = vcmp.ge.f32.partialorder %v1119_v17, 0.0  ;;  %v1136_v19 = vmul.f32 0.01, %v1119_v17 }
 0x229   : > { %v988_v20 = vsel %vm980_vm9, %v967_v15, %v984_v14  ;;  %v971_v21 = vpop.f32.mrb[6].mxu1  ;;  %v1121_v22 = vpop.f32.mrb[5].mxu0 }
 0x22a   : > { %1144 = vst [vmem:[%s1780_s16] sm:$0xff] %v988_v20  ;;  %v989_v23 = vsel %vm981_vm10, %v969_v16, %v985_v18  ;;  %v1140_v24 = vsel %vm1132_vm11, %v1119_v17, %v1136_v19  ;;  %vm982_vm12 = vcmp.ge.f32.partialorder %v971_v21, 0.0  ;;  %v986_v25 = vmul.f32 0.01, %v971_v21  ;;  %v973_v26 = vpop.f32.mrb[7].mxu1  ;;  %v1123_v27 = vpop.f32.mrb[6].mxu0 }
 0x22b   : > { %1145 = vst [vmem:[%s1780_s16 + $0x8] sm:$0xff] %v989_v23  ;;  %1148 = vst [vmem:[%s1780_s16 + $0x10] sm:$0xff] %v1140_v24  ;;  %vm1133_vm13 = vcmp.ge.f32.partialorder %v1121_v22, 0.0  ;;  %v1137_v28 = vmul.f32 0.01, %v1121_v22  ;;  %vm983_vm14 = vcmp.ge.f32.partialorder %v973_v26, 0.0 }
 0x22c   : > { %v987_v29 = vmul.f32 0.01, %v973_v26  ;;  %v990_v30 = vsel %vm982_vm12, %v971_v21, %v986_v25  ;;  %vm1134_vm15 = vcmp.ge.f32.partialorder %v1123_v27, 0.0  ;;  %v1138_v31 = vmul.f32 0.01, %v1123_v27  ;;  %v1125_v32 = vpop.f32.mrb[7].mxu0 }
 0x22d   : > { %1146 = vst [vmem:[%s1780_s16 + $0x20] sm:$0xff] %v990_v30  ;;  %v1141_v33 = vsel %vm1133_vm13, %v1121_v22, %v1137_v28  ;;  %vm1135_vm0 = vcmp.ge.f32.partialorder %v1125_v32, 0.0  ;;  %v1139_v35 = vmul.f32 0.01, %v1125_v32 }
 0x22e   : > { %v991_v34 = vsel %vm983_vm14, %v973_v26, %v987_v29  ;;  %1149 = vst [vmem:[%s1780_s16 + $0x18] sm:$0xff] %v1141_v33  ;;  %v1142_v36 = vsel %vm1134_vm15, %v1123_v27, %v1138_v31 }
 0x22f   : > { %1147 = vst [vmem:[%s1780_s16 + $0x28] sm:$0xff] %v991_v34  ;;  %1150 = vst [vmem:[%s1780_s16 + $0x30] sm:$0xff] %v1142_v36  ;;  %v1143_v37 = vsel %vm1135_vm0, %v1125_v32, %v1139_v35 }
 0x230   : > { %1151 = vst [vmem:[%s1780_s16 + $0x38] sm:$0xff] %v1143_v37 }
 0x231 PF: > { %s13_s12 = sadd.s32 1, %s1490_s12  }
 0x232   : > { %p10_p4 = scmp.ge.s32.totalorder %s13_s12, 4  }
 0x234   :  { %12 = sbr.rel (!%p10_p4) target bundleno = 1 (0x1), region = 67 }

</bundles_post_ra>
